<compile_context>
chip_gen: v5e
topology: v5e:2x2
jax: 0.10.0
libtpu: 0.0.40
codegen_flags: <defaults>
</compile_context>

<pallas_src>
import jax
import jax.numpy as jnp
from jax import lax
from jax.experimental import pallas as pl
from jax.experimental.pallas import tpu as pltpu

# TODO(synk): RMSNorm class is not shown in the source; eps=1e-6 and the standard
# x * rsqrt(mean(x^2) + eps) * g formulation are assumed.
RMS_EPS = 1e-6

LANE = 128        # batch lives on lanes inside the kernel
CHUNK = 512       # lanes processed per inner sub-chunk (keeps live set ~32 vregs)
MAX_TILE = 2048   # max batch lanes per grid step (amortizes ~0.35 us/step overhead)


def _leaky_relu(x, slope=0.2):
    return jnp.where(x > 0, x, slope * x)


def _round_up(x, m):
    return ((x + m - 1) // m) * m


def _num_tensorcores_per_chip():
    """2 TensorCores on v7x (shard the batch grid); 1 on v5e/v6e."""
    try:
        kind = jax.devices()[0].device_kind.lower()
        if "v7" in kind:
            return 2
    except Exception:
        pass
    return 1


def _choose_tiling(B, num_cores):
    """Return (bn, chunk, B_pad).

    bn is always a multiple of 128 (unmasked lane-dense stores) and, when it
    exceeds CHUNK, a multiple of CHUNK so the in-kernel chunk loop divides it
    evenly.  B_pad is a multiple of bn (host-side zero padding handles ragged B).
    """
    b_lane = _round_up(B, LANE)
    if num_cores > 1 and b_lane >= 2 * LANE:
        per_core = _round_up((b_lane + num_cores - 1) // num_cores, LANE)
    else:
        per_core = b_lane
    bn = min(per_core, MAX_TILE)
    if bn > CHUNK:
        bn = min(_round_up(bn, CHUNK), MAX_TILE)
    chunk = min(bn, CHUNK)
    B_pad = _round_up(B, bn)
    return bn, chunk, B_pad


def _make_disc_kernel(chunk, n_chunks):
    def disc_kernel(z_ref, w0T_ref, b0_ref, w1T_ref, b1_ref, w2c_ref, b2_ref,
                    out_ref):
        # Resident (tiny) weights: load once per grid step.
        w0T = w0T_ref[...]          # (H0, latent) bf16
        b0 = b0_ref[...]            # (H0, 1) f32
        w1T = w1T_ref[...]          # (H1, H0) f32, g0 folded in
        b1 = b1_ref[...]            # (H1, 1) f32
        w2c = w2c_ref[...]          # (H1, 1) f32, g1 folded in
        b2 = b2_ref[0, 0]           # scalar (SMEM)

        def body(c, carry):
            start = pl.multiple_of(c * chunk, chunk)
            x = z_ref[pl.ds(start, chunk), :]               # (chunk, latent) bf16

            # Block 0: Linear -> LeakyReLU -> RMSNorm (gain g0 folded into w1T).
            # Contract latent of both operands -> (H0, chunk): batch-on-lanes
            # without ever transposing z.
            h = lax.dot_general(w0T, x, (((1,), (1,)), ((), ())),
                                preferred_element_type=jnp.float32)
            h = h + b0
            h = _leaky_relu(h)
            h = h * lax.rsqrt(jnp.mean(h * h, axis=0, keepdims=True) + RMS_EPS)

            # Block 1: LinearWithDropout (dropout = identity at eval)
            #          -> LeakyReLU -> RMSNorm (gain g1 folded into w2c).
            h = jnp.dot(w1T, h, preferred_element_type=jnp.float32) + b1
            h = _leaky_relu(h)
            h = h * lax.rsqrt(jnp.mean(h * h, axis=0, keepdims=True) + RMS_EPS)

            # Final Linear(H1, 1): N=1 matmul replaced by a sublane reduce;
            # output (1, chunk) stays lane-dense.
            logit = jnp.sum(w2c * h, axis=0, keepdims=True) + b2
            out_ref[:, pl.ds(start, chunk)] = (
                jax.nn.sigmoid(logit).astype(out_ref.dtype))
            return carry

        lax.fori_loop(0, n_chunks, body, 0, unroll=True)

    return disc_kernel


def discriminator_forward(z, params):
    """z: (B, latent_dim) float.  Returns (B, 1) f32 probabilities (eval forward)."""
    B, latent = z.shape
    w0, b0, g0, w1, b1, g1, w2, b2 = params
    H0 = w0.shape[1]
    H1 = w1.shape[1]

    # Host-side prep (tiny, done once): fold RMSNorm gains into next layer's
    # weights; transpose only the weights (not z).
    w0T = w0.T.astype(jnp.bfloat16)                             # (H0, latent)
    b0c = b0.reshape(H0, 1).astype(jnp.float32)
    w1Tf = (g0.reshape(H0, 1) * w1).T.astype(jnp.float32)       # (H1, H0)
    b1c = b1.reshape(H1, 1).astype(jnp.float32)
    w2cf = (g1.reshape(H1, 1) * w2).astype(jnp.float32)         # (H1, 1)
    b2s = b2.reshape(1, 1).astype(jnp.float32)

    num_cores = _num_tensorcores_per_chip()
    bn, chunk, B_pad = _choose_tiling(B, num_cores)

    zq = z.astype(jnp.bfloat16)        # halve HBM traffic of the only large input
    if B_pad != B:
        zq = jnp.pad(zq, ((0, B_pad - B), (0, 0)))

    kernel = _make_disc_kernel(chunk, bn // chunk)

    out = pl.pallas_call(
        kernel,
        out_shape=jax.ShapeDtypeStruct((1, B_pad), jnp.float32),
        grid_spec=pltpu.PrefetchScalarGridSpec(
            num_scalar_prefetch=0,
            grid=(B_pad // bn,),
            in_specs=[
                pl.BlockSpec((bn, latent), lambda i: (i, 0)),    # z tile (natural)
                pl.BlockSpec((H0, latent), lambda i: (0, 0)),    # w0T
                pl.BlockSpec((H0, 1), lambda i: (0, 0)),         # b0
                pl.BlockSpec((H1, H0), lambda i: (0, 0)),        # w1T (g0 folded)
                pl.BlockSpec((H1, 1), lambda i: (0, 0)),         # b1
                pl.BlockSpec((H1, 1), lambda i: (0, 0)),         # w2c (g1 folded)
                pl.BlockSpec(memory_space=pltpu.MemorySpace.SMEM),  # b2 scalar
            ],
            out_specs=pl.BlockSpec((1, bn), lambda i: (0, i)),
        ),
        compiler_params=pltpu.CompilerParams(
            dimension_semantics=("parallel",)),
    )(zq, w0T, b0c, w1Tf, b1c, w2cf, b2s)

    return out[:, :B].T                                          # (B, 1)


def init_params(key, latent_dim, disc_hidden_dims):
    """Deterministic synthetic parameters matching the module's shapes."""
    H0, H1 = disc_hidden_dims
    ks = jax.random.split(key, 8)
    scale = 0.05
    w0 = scale * jax.random.normal(ks[0], (latent_dim, H0), jnp.float32)
    b0 = scale * jax.random.normal(ks[1], (1, H0), jnp.float32)
    g0 = 1.0 + 0.1 * jax.random.normal(ks[2], (1, H0), jnp.float32)  # RMSNorm gain
    w1 = scale * jax.random.normal(ks[3], (H0, H1), jnp.float32)
    b1 = scale * jax.random.normal(ks[4], (1, H1), jnp.float32)
    g1 = 1.0 + 0.1 * jax.random.normal(ks[5], (1, H1), jnp.float32)
    w2 = scale * jax.random.normal(ks[6], (H1, 1), jnp.float32)
    b2 = scale * jax.random.normal(ks[7], (1, 1), jnp.float32)
    return (w0, b0, g0, w1, b1, g1, w2, b2)


def _rmsnorm_ref(x, gain):
    inv = lax.rsqrt(jnp.mean(x * x, axis=-1, keepdims=True) + RMS_EPS)
    return x * inv * gain


def reference_forward(z, params):
    """Pure-JAX f32 reference (gains NOT folded) for a sanity check."""
    w0, b0, g0, w1, b1, g1, w2, b2 = params
    h = z @ w0 + b0
    h = _leaky_relu(h)
    h = _rmsnorm_ref(h, g0)
    h = h @ w1 + b1
    h = _leaky_relu(h)
    h = _rmsnorm_ref(h, g1)
    return jax.nn.sigmoid(h @ w2 + b2)


if __name__ == "__main__":
    latent_dim = 32
    disc_hidden_dims = [64, 64]

    key = jax.random.PRNGKey(0)
    kp, kz1, kz2 = jax.random.split(key, 3)
    params = init_params(kp, latent_dim, disc_hidden_dims)

    # Small batch: single tile, lane-padded to 128 (unmasked store path).
    z_small = jax.random.normal(kz1, (16, latent_dim), jnp.float32)
    out_small = jax.block_until_ready(discriminator_forward(z_small, params))
    ref_small = reference_forward(z_small, params)
    assert out_small.shape == (16, 1)
    # bf16 input/first-layer weights vs f32 reference -> loosened tolerance.
    assert jnp.allclose(out_small, ref_small, atol=5e-3), "small-batch mismatch"

    # Ragged larger batch: exercises host-side padding + in-kernel chunk loop
    # (and the 2-TC grid split when running on v7x).
    z_big = jax.random.normal(kz2, (1200, latent_dim), jnp.float32)
    out_big = jax.block_until_ready(discriminator_forward(z_big, params))
    ref_big = reference_forward(z_big, params)
    assert out_big.shape == (1200, 1)
    assert jnp.allclose(out_big, ref_big, atol=5e-3), "large-batch mismatch"

    print("KERNEL_OK")
</pallas_src>

<mosaic_0001>
module attributes {stable_mosaic.version = 11 : i64} {
  func.func @disc_kernel(%arg0: i32, %arg1: memref<128x32xbf16, #tpu.memory_space<vmem>>, %arg2: memref<64x32xbf16, #tpu.memory_space<vmem>>, %arg3: memref<64x1xf32, #tpu.memory_space<vmem>>, %arg4: memref<64x64xf32, #tpu.memory_space<vmem>>, %arg5: memref<64x1xf32, #tpu.memory_space<vmem>>, %arg6: memref<64x1xf32, #tpu.memory_space<vmem>>, %arg7: memref<1x1xf32, #tpu.memory_space<smem>>, %arg8: memref<1x128xf32, #tpu.memory_space<vmem>>) attributes {dimension_semantics = [#tpu.dimension_semantics<parallel>], iteration_bounds = array<i64: 1>, scalar_prefetch = 0 : i64, scratch_operands = 0 : i64, tpu.core_type = #tpu.core_type<tc>, window_params = [{transform_indices = @transform_0, window_bounds = array<i64: 128, 32>}, {pipeline_mode = #tpu.pipeline_mode<synchronous>, transform_indices = @transform_1, window_bounds = array<i64: 64, 32>}, {pipeline_mode = #tpu.pipeline_mode<synchronous>, transform_indices = @transform_2, window_bounds = array<i64: 64, 1>}, {pipeline_mode = #tpu.pipeline_mode<synchronous>, transform_indices = @transform_3, window_bounds = array<i64: 64, 64>}, {pipeline_mode = #tpu.pipeline_mode<synchronous>, transform_indices = @transform_4, window_bounds = array<i64: 64, 1>}, {pipeline_mode = #tpu.pipeline_mode<synchronous>, transform_indices = @transform_5, window_bounds = array<i64: 64, 1>}, {transform_indices = @transform_6, window_bounds = array<i64: 1, 1>}, {transform_indices = @transform_7, window_bounds = array<i64: 1, 128>}]} {
    %c0 = arith.constant 0 : index
    %c0_0 = arith.constant 0 : index
    %0 = vector.load %arg2[%c0, %c0_0] : memref<64x32xbf16, #tpu.memory_space<vmem>>, vector<64x32xbf16>
    %c0_1 = arith.constant 0 : index
    %c0_2 = arith.constant 0 : index
    %1 = vector.load %arg3[%c0_1, %c0_2] : memref<64x1xf32, #tpu.memory_space<vmem>>, vector<64x1xf32>
    %c0_3 = arith.constant 0 : index
    %c0_4 = arith.constant 0 : index
    %2 = vector.load %arg4[%c0_3, %c0_4] : memref<64x64xf32, #tpu.memory_space<vmem>>, vector<64x64xf32>
    %c0_5 = arith.constant 0 : index
    %c0_6 = arith.constant 0 : index
    %3 = vector.load %arg5[%c0_5, %c0_6] : memref<64x1xf32, #tpu.memory_space<vmem>>, vector<64x1xf32>
    %c0_7 = arith.constant 0 : index
    %c0_8 = arith.constant 0 : index
    %4 = vector.load %arg6[%c0_7, %c0_8] : memref<64x1xf32, #tpu.memory_space<vmem>>, vector<64x1xf32>
    %c0_9 = arith.constant 0 : index
    %c0_10 = arith.constant 0 : index
    %5 = memref.load %arg7[%c0_9, %c0_10] : memref<1x1xf32, #tpu.memory_space<smem>>
    %c0_i32 = arith.constant 0 : i32
    %c128_i32 = arith.constant 128 : i32
    %6 = arith.muli %c0_i32, %c128_i32 : i32
    %7 = tpu.assume_multiple %6, 128 : i32
    %8 = arith.index_cast %7 : i32 to index
    %c0_11 = arith.constant 0 : index
    %9 = vector.load %arg1[%8, %c0_11] : memref<128x32xbf16, #tpu.memory_space<vmem>>, vector<128x32xbf16>
    %cst = arith.constant dense<0.000000e+00> : vector<64x128xf32>
    %10 = tpu.matmul %0, %9, %cst {dimension_numbers = #tpu.dot_dimension_numbers<[1], [1], [0], [0], [0, 0, 1, 0], [], []>} : vector<64x32xbf16>, vector<128x32xbf16>, vector<64x128xf32> -> vector<64x128xf32>
    %11 = vector.broadcast %1 : vector<64x1xf32> to vector<64x128xf32>
    %12 = arith.addf %10, %11 : vector<64x128xf32>
    %cst_12 = arith.constant 0.000000e+00 : f32
    %13 = vector.broadcast %cst_12 : f32 to vector<64x128xf32>
    %14 = arith.cmpf ogt, %12, %13 : vector<64x128xf32>
    %cst_13 = arith.constant 2.000000e-01 : f32
    %15 = vector.broadcast %cst_13 : f32 to vector<64x128xf32>
    %16 = arith.mulf %15, %12 : vector<64x128xf32>
    %17 = arith.select %14, %12, %16 : vector<64x128xi1>, vector<64x128xf32>
    %18 = arith.mulf %17, %17 : vector<64x128xf32>
    %cst_14 = arith.constant dense<0.000000e+00> : vector<128xf32>
    %19 = vector.multi_reduction <add>, %18, %cst_14 [0] : vector<64x128xf32> to vector<128xf32>
    %20 = vector.shape_cast %19 : vector<128xf32> to vector<1x128xf32>
    %cst_15 = arith.constant 6.400000e+01 : f32
    %21 = vector.broadcast %cst_15 : f32 to vector<1x128xf32>
    %22 = arith.divf %20, %21 : vector<1x128xf32>
    %cst_16 = arith.constant 9.99999997E-7 : f32
    %23 = vector.broadcast %cst_16 : f32 to vector<1x128xf32>
    %24 = arith.addf %22, %23 : vector<1x128xf32>
    %25 = math.rsqrt %24 : vector<1x128xf32>
    %26 = vector.broadcast %25 : vector<1x128xf32> to vector<64x128xf32>
    %27 = arith.mulf %17, %26 : vector<64x128xf32>
    %cst_17 = arith.constant dense<0.000000e+00> : vector<64x128xf32>
    %28 = tpu.matmul %2, %27, %cst_17 {dimension_numbers = #tpu.dot_dimension_numbers<[1], [0], [0], [1], [0, 0, 1, 1], [], []>} : vector<64x64xf32>, vector<64x128xf32>, vector<64x128xf32> -> vector<64x128xf32>
    %29 = vector.broadcast %3 : vector<64x1xf32> to vector<64x128xf32>
    %30 = arith.addf %28, %29 : vector<64x128xf32>
    %cst_18 = arith.constant 0.000000e+00 : f32
    %31 = vector.broadcast %cst_18 : f32 to vector<64x128xf32>
    %32 = arith.cmpf ogt, %30, %31 : vector<64x128xf32>
    %cst_19 = arith.constant 2.000000e-01 : f32
    %33 = vector.broadcast %cst_19 : f32 to vector<64x128xf32>
    %34 = arith.mulf %33, %30 : vector<64x128xf32>
    %35 = arith.select %32, %30, %34 : vector<64x128xi1>, vector<64x128xf32>
    %36 = arith.mulf %35, %35 : vector<64x128xf32>
    %cst_20 = arith.constant dense<0.000000e+00> : vector<128xf32>
    %37 = vector.multi_reduction <add>, %36, %cst_20 [0] : vector<64x128xf32> to vector<128xf32>
    %38 = vector.shape_cast %37 : vector<128xf32> to vector<1x128xf32>
    %cst_21 = arith.constant 6.400000e+01 : f32
    %39 = vector.broadcast %cst_21 : f32 to vector<1x128xf32>
    %40 = arith.divf %38, %39 : vector<1x128xf32>
    %cst_22 = arith.constant 9.99999997E-7 : f32
    %41 = vector.broadcast %cst_22 : f32 to vector<1x128xf32>
    %42 = arith.addf %40, %41 : vector<1x128xf32>
    %43 = math.rsqrt %42 : vector<1x128xf32>
    %44 = vector.broadcast %43 : vector<1x128xf32> to vector<64x128xf32>
    %45 = arith.mulf %35, %44 : vector<64x128xf32>
    %46 = vector.broadcast %4 : vector<64x1xf32> to vector<64x128xf32>
    %47 = arith.mulf %46, %45 : vector<64x128xf32>
    %cst_23 = arith.constant dense<0.000000e+00> : vector<128xf32>
    %48 = vector.multi_reduction <add>, %47, %cst_23 [0] : vector<64x128xf32> to vector<128xf32>
    %49 = vector.shape_cast %48 : vector<128xf32> to vector<1x128xf32>
    %50 = vector.broadcast %5 : f32 to vector<1x128xf32>
    %51 = arith.addf %49, %50 : vector<1x128xf32>
    %52 = arith.negf %51 : vector<1x128xf32>
    %53 = math.exp %52 : vector<1x128xf32>
    %cst_24 = arith.constant 1.000000e+00 : f32
    %54 = vector.broadcast %cst_24 : f32 to vector<1x128xf32>
    %55 = arith.addf %54, %53 : vector<1x128xf32>
    %56 = arith.divf %54, %55 : vector<1x128xf32>
    %c0_25 = arith.constant 0 : index
    %57 = arith.index_cast %7 : i32 to index
    %58 = vector.load %arg8[%c0_25, %57] : memref<1x128xf32, #tpu.memory_space<vmem>>, vector<1x128xf32>
    tpu.vector_store %arg8[%c0_25, %57], %56 {strides = array<i32>} : memref<1x128xf32, #tpu.memory_space<vmem>>, vector<1x128xf32>,
    %c1_i32 = arith.constant 1 : i32
    return
  }
  func.func @transform_0(%arg0: i32) -> (i32, i32) {
    %c0_i32 = arith.constant 0 : i32
    %c0_i32_0 = arith.constant 0 : i32
    return %arg0, %c0_i32 : i32, i32
  }
  func.func @transform_1(%arg0: i32) -> (i32, i32) {
    %c0_i32 = arith.constant 0 : i32
    %c0_i32_0 = arith.constant 0 : i32
    %c0_i32_1 = arith.constant 0 : i32
    return %c0_i32, %c0_i32_0 : i32, i32
  }
  func.func @transform_2(%arg0: i32) -> (i32, i32) {
    %c0_i32 = arith.constant 0 : i32
    %c0_i32_0 = arith.constant 0 : i32
    %c0_i32_1 = arith.constant 0 : i32
    return %c0_i32, %c0_i32_0 : i32, i32
  }
  func.func @transform_3(%arg0: i32) -> (i32, i32) {
    %c0_i32 = arith.constant 0 : i32
    %c0_i32_0 = arith.constant 0 : i32
    %c0_i32_1 = arith.constant 0 : i32
    return %c0_i32, %c0_i32_0 : i32, i32
  }
  func.func @transform_4(%arg0: i32) -> (i32, i32) {
    %c0_i32 = arith.constant 0 : i32
    %c0_i32_0 = arith.constant 0 : i32
    %c0_i32_1 = arith.constant 0 : i32
    return %c0_i32, %c0_i32_0 : i32, i32
  }
  func.func @transform_5(%arg0: i32) -> (i32, i32) {
    %c0_i32 = arith.constant 0 : i32
    %c0_i32_0 = arith.constant 0 : i32
    %c0_i32_1 = arith.constant 0 : i32
    return %c0_i32, %c0_i32_0 : i32, i32
  }
  func.func @transform_6(%arg0: i32) -> (i32, i32) {
    %c0_i32 = arith.constant 0 : i32
    %c0_i32_0 = arith.constant 0 : i32
    %c0_i32_1 = arith.constant 0 : i32
    return %c0_i32, %c0_i32_0 : i32, i32
  }
  func.func @transform_7(%arg0: i32) -> (i32, i32) {
    %c0_i32 = arith.constant 0 : i32
    %c0_i32_0 = arith.constant 0 : i32
    return %c0_i32, %arg0 : i32, i32
  }
}

</mosaic_0001>

<bundles_post_ra>
// kernel: tpu_custom_call.1
= control target key start
LH: loop header
LB: loop body
LE: loop exit
PB: predicated region body
PF: predicated region fallthrough
CT: control target
= control target key end

     0   :  { %vm185_vm0 = vcmask 261120   ;;  %v724_v1 = vmov 0   ;;  %s954_s0 = inlined_call_operand.vmem [shape: bf16[128,32], index: 0, kind: input, shape index: {}]   ;;  %s955_s1 = inlined_call_operand.vmem [shape: bf16[64,32], index: 1, kind: input, shape index: {}]   ;;  %s956_s2 = inlined_call_operand.vmem [shape: f32[64,1], index: 2, kind: input, shape index: {}]   ;;  %s957_s3 = inlined_call_operand.vmem [shape: f32[64,64], index: 3, kind: input, shape index: {}]   ;;  %s958_s4 = inlined_call_operand.vmem [shape: f32[64,1], index: 4, kind: input, shape index: {}]   ;;  %s959_s5 = inlined_call_operand.vmem [shape: f32[64,1], index: 5, kind: input, shape index: {}]   ;;  %s960_s6 = inlined_call_operand.<no memory space> [shape: f32[1,1], index: 6, kind: input, shape index: {}]   ;;  %s961_s7 = inlined_call_operand.hbm [shape: f32[1,128], index: 7, kind: output, shape index: {}]  }
   0x1   :  { %v665_v0 = vld [vmem:[%s954_s0 + $0x38] sm:$0xff]  ;;  %685 = vset.pattern.permute.xlu0 %v724_v1  ;;  %v36_v2 = vld [vmem:[%s956_s2] sm:$0xff]  ;;  %686 = vset.pattern.permute.xlu1 %v724_v1 }
   0x2   :  { %v220_v3 = vsel %vm185_vm0, %v665_v0, 0  ;;  %87 = vperm.xlu0 %685, %v36_v2   ;;  %687 = vset.pattern.permute.xlu2 %v724_v1 }
   0x3   :  { %13 = vsyncpa [#allocation4], 0  ;;  %222 = vmatpush.bf16.xpose.msra.mxu0 %v220_v3  ;;  %666 = vmatpush.bf16.xpose.msra.mxu2 %v220_v3  ;;  %v38_v4 = vld [vmem:[%s956_s2 + $0x10] sm:$0xff]  ;;  %v37_v6 = vld [vmem:[%s956_s2 + $0x8] sm:$0xff]  ;;  %vm363_vm13 = vcmask 523264   ;;  %s726_s14 = smov [#allocation3]  }
   0x4   :  { %667 = vmatpush.bf16.xpose.msra.mxu3 %v220_v3  ;;  %v664_v5 = vld [vmem:[%s954_s0 + $0x30] sm:$0xff]  ;;  %97 = vperm.xlu1 %686, %v38_v4   ;;  %v39_v8 = vld [vmem:[%s956_s2 + $0x18] sm:$0xff]  ;;  %v663_v9 = vld [vmem:[%s954_s0 + $0x28] sm:$0xff]  ;;  %s582_s15 = sshll.u32 %s726_s14, 4  ;;  %s583_s15 = int_to_ptr.vmem [resolvable:$true] %s582_s15 }
   0x5   :  { %v217_v7 = vsel %vm185_vm0, %v664_v5, 0  ;;  %v42_v10 = vld [vmem:[%s956_s2 + $0x30] sm:$0xff]  ;;  %v214_v11 = vsel %vm185_vm0, %v663_v9, 0  ;;  %v43_v12 = vld [vmem:[%s956_s2 + $0x38] sm:$0xff]  ;;  %v662_v13 = vld [vmem:[%s954_s0 + $0x20] sm:$0xff] }
   0x6   :  { %v53_v14 = vld [vmem:[%s958_s4 + $0x8] sm:$0xff]  ;;  %v211_v15 = vsel %vm185_vm0, %v662_v13, 0  ;;  %v54_v16 = vld [vmem:[%s958_s4 + $0x10] sm:$0xff]  ;;  %v661_v17 = vld [vmem:[%s954_s0 + $0x18] sm:$0xff] }
   0x7   :  { %v40_v18 = vld [vmem:[%s956_s2 + $0x20] sm:$0xff]  ;;  %v208_v20 = vsel %vm185_vm0, %v661_v17, 0  ;;  %v57_v21 = vld [vmem:[%s958_s4 + $0x28] sm:$0xff]  ;;  %v660_v23 = vld [vmem:[%s954_s0 + $0x10] sm:$0xff]  ;;  %v725_v17 = vmov 64.0  }
   0x8   :  { %107 = vperm.xlu2 %687, %v40_v18   ;;  %v56_v19 = vld [vmem:[%s958_s4 + $0x20] sm:$0xff]  ;;  %v41_v22 = vld [vmem:[%s956_s2 + $0x28] sm:$0xff]  ;;  %v59_v24 = vld [vmem:[%s958_s4 + $0x38] sm:$0xff]  ;;  %v205_v25 = vsel %vm185_vm0, %v660_v23, 0  ;;  %688 = vrcp.f32 %v725_v17 }
   0x9   :  { %v60_v26 = vld [vmem:[%s959_s5] sm:$0xff]  ;;  %v659_v28 = vld [vmem:[%s954_s0 + $0x8] sm:$0xff]  ;;  %v62_v29 = vld [vmem:[%s959_s5 + $0x10] sm:$0xff] }
   0xa   :  { %92 = vperm.xlu0 %685, %v37_v6   ;;  %v52_v27 = vld [vmem:[%s958_s4] sm:$0xff]  ;;  %v202_v30 = vsel %vm185_vm0, %v659_v28, 0  ;;  %v63_v31 = vld [vmem:[%s959_s5 + $0x18] sm:$0xff]  ;;  %v65_v34 = vld [vmem:[%s959_s5 + $0x28] sm:$0xff] }
   0xb   :  { %223 = vmatpush.bf16.xpose.msra.mxu0 %v217_v7  ;;  %668 = vmatpush.bf16.xpose.msra.mxu2 %v217_v7  ;;  %v55_v32 = vld [vmem:[%s958_s4 + $0x18] sm:$0xff]  ;;  %v658_v33 = vld [vmem:[%s954_s0] sm:$0xff]  ;;  %v66_v36 = vld [vmem:[%s959_s5 + $0x30] sm:$0xff] }
   0xc   :  { %669 = vmatpush.bf16.xpose.msra.mxu3 %v217_v7  ;;  %102 = vperm.xlu1 %686, %v39_v8   ;;  %v199_v35 = vsel %vm185_vm0, %v658_v33, 0  ;;  %v58_v37 = vld [vmem:[%s958_s4 + $0x30] sm:$0xff]  ;;  %v654_v38 = vld [vmem:[%s955_s1] sm:$0xff]  ;;  %v655_v39 = vld [vmem:[%s955_s1 + $0x8] sm:$0xff] }
   0xd   :  { %v656_v40 = vld [vmem:[%s955_s1 + $0x10] sm:$0xff]  ;;  %v61_v41 = vld [vmem:[%s959_s5 + $0x8] sm:$0xff]  ;;  %v64_v42 = vld [vmem:[%s959_s5 + $0x20] sm:$0xff] }
   0xe   :  { %v657_v43 = vld [vmem:[%s955_s1 + $0x18] sm:$0xff] }
   0xf   :  { %v67_v44 = vld [vmem:[%s959_s5 + $0x38] sm:$0xff] }
  0x10   :  { %112 = vperm.xlu2 %687, %v41_v22  }
  0x12   :  { %117 = vperm.xlu0 %685, %v42_v10  }
  0x13   :  { %224 = vmatpush.bf16.xpose.msra.mxu0 %v214_v11  ;;  %670 = vmatpush.bf16.xpose.msra.mxu2 %v214_v11 }
  0x14   :  { %671 = vmatpush.bf16.xpose.msra.mxu3 %v214_v11  ;;  %122 = vperm.xlu1 %686, %v43_v12  }
  0x18   :  { %325 = vperm.xlu2 %687, %v52_v27  }
  0x1a   :  { %330 = vperm.xlu0 %685, %v53_v14  }
  0x1b   :  { %225 = vmatpush.bf16.xpose.msra.mxu0 %v211_v15  ;;  %672 = vmatpush.bf16.xpose.msra.mxu2 %v211_v15 }
  0x1c   :  { %673 = vmatpush.bf16.xpose.msra.mxu3 %v211_v15  ;;  %335 = vperm.xlu1 %686, %v54_v16  }
  0x20   :  { %340 = vperm.xlu2 %687, %v55_v32  }
  0x22   :  { %345 = vperm.xlu0 %685, %v56_v19  }
  0x23   :  { %226 = vmatpush.bf16.xpose.msra.mxu0 %v208_v20  ;;  %674 = vmatpush.bf16.xpose.msra.mxu2 %v208_v20 }
  0x24   :  { %675 = vmatpush.bf16.xpose.msra.mxu3 %v208_v20  ;;  %350 = vperm.xlu1 %686, %v57_v21  }
  0x28   :  { %355 = vperm.xlu2 %687, %v58_v37  }
  0x2a   :  { %360 = vperm.xlu0 %685, %v59_v24  }
  0x2b   :  { %227 = vmatpush.bf16.xpose.msra.mxu0 %v205_v25  ;;  %676 = vmatpush.bf16.xpose.msra.mxu2 %v205_v25 }
  0x2c   :  { %677 = vmatpush.bf16.xpose.msra.mxu3 %v205_v25  ;;  %496 = vperm.xlu1 %686, %v60_v26   ;;  %v689_v25 = vpop.eup %688 }
  0x2d   :  { %v297_v33 = vmul.f32 64.0, %v689_v25  ;;  %vm301_vm9 = vweird.f32 %v689_v25 }
  0x30   :  { %501 = vperm.xlu2 %687, %v61_v41  }
  0x32   :  { %506 = vperm.xlu0 %685, %v62_v29  }
  0x33   :  { %228 = vmatpush.bf16.xpose.msra.mxu0 %v202_v30  ;;  %678 = vmatpush.bf16.xpose.msra.mxu2 %v202_v30 }
  0x34   :  { %679 = vmatpush.bf16.xpose.msra.mxu3 %v202_v30  ;;  %511 = vperm.xlu1 %686, %v63_v31  }
  0x38   :  { %516 = vperm.xlu2 %687, %v64_v42  }
  0x3a   :  { %521 = vperm.xlu0 %685, %v65_v34  }
  0x3b   :  { %229 = vmatpush.bf16.xpose.msra.mxu0 %v199_v35  ;;  %680 = vmatpush.bf16.xpose.msra.mxu2 %v199_v35 }
  0x3c   :  { %681 = vmatpush.bf16.xpose.msra.mxu3 %v199_v35  ;;  %526 = vperm.xlu1 %686, %v66_v36  }
  0x40   :  { %531 = vperm.xlu2 %687, %v67_v44  }
  0x42   :  { %641 = vmatmul.msk.bf16.vlgmr.msra.gmra.mxu0 %vm185_vm0, %v654_v38  ;;  %642 = vmatmul.msk.bf16.vlgmr.msra.gmra.mxu2 %vm185_vm0, %v655_v39  ;;  %v298_v38 = vsub.f32 1.0, %v297_v33 }
  0x43   :  { %643 = vmatmul.msk.bf16.vlgmr.msra.gmra.mxu3 %vm185_vm0, %v656_v40 }
  0x44   :  { %v299_v41 = vmul.f32 %v689_v25, %v298_v38 }
  0x46   :  { %v300_v44 = vadd.f32 %v689_v25, %v299_v41 }
  0x53   :  { %644 = vmatmul.msk.bf16.gmra.mxu3 %vm185_vm0, %v657_v43 }
  0x62   :  { %v108_v56 = vpop.permute.xlu2 %107 }
  0x6a   :  { %v113_v7 = vpop.permute.xlu2 %112 }
  0x74   :  { %v88_v45 = vpop.permute.xlu0 %87 }
  0x76   :  { %v98_v47 = vpop.permute.xlu1 %97 }
  0x7c   :  { %v93_v51 = vpop.permute.xlu0 %92 }
  0x7e   :  { %v103_v58 = vpop.permute.xlu1 %102 }
  0x84   :  { %v118_v12 = vpop.permute.xlu0 %117 }
  0x86   :  { %v123_v26 = vpop.permute.xlu1 %122 }
  0x8e   :  { %v336_v17 = vpop.permute.xlu1 %335 }
  0xbf   :  { %v231_v46 = vpop.f32.mrf.mxu0 }
  0xc0   :  { %v232_v48 = vadd.f32 %v231_v46, %v88_v45 }
  0xc2   :  { %v259_v54 = vmul.f32 0.2, %v232_v48  ;;  %vm251_vm1 = vcmp.gt.f32.partialorder %v232_v48, 0.0 }
  0xc4   :  { %v887_v59 = vsel %vm251_vm1, %v232_v48, %v259_v54 }
  0xc5   :  { %v236_v49 = vpop.f32.mrf.mxu2  ;;  %v275_v1 = vmul.f32 %v887_v59, %v887_v59 }
  0xc6   :  { %v241_v50 = vpop.f32.mrf.mxu3  ;;  %v237_v55 = vadd.f32 %v236_v49, %v98_v47  ;;  %v903_v47 = vsel %vm301_vm9, %v689_v25, %v300_v44 }
  0xc7   :  { %v233_v52 = vpop.f32.mrf.mxu0  ;;  %v242_v5 = vadd.f32 %v241_v50, %v108_v56 }
  0xc8   :  { %v234_v53 = vadd.f32 %v233_v52, %v93_v51  ;;  %v261_v60 = vmul.f32 0.2, %v237_v55  ;;  %vm253_vm3 = vcmp.gt.f32.partialorder %v237_v55, 0.0 }
  0xc9   :  { %v263_v10 = vmul.f32 0.2, %v242_v5  ;;  %vm255_vm5 = vcmp.gt.f32.partialorder %v242_v5, 0.0 }
  0xca   :  { %vm252_vm2 = vcmp.gt.f32.partialorder %v234_v53, 0.0  ;;  %v260_v57 = vmul.f32 0.2, %v234_v53  ;;  %v895_v4 = vsel %vm253_vm3, %v237_v55, %v261_v60 }
  0xcb   :  { %v277_v8 = vmul.f32 %v895_v4, %v895_v4  ;;  %v271_v18 = vsel %vm255_vm5, %v242_v5, %v263_v10  ;;  %v44_v5 = vld [vmem:[%s957_s3] sm:$0xff] }
  0xcc   :  { %v889_v61 = vsel %vm252_vm2, %v234_v53, %v260_v57  ;;  %v279_v22 = vmul.f32 %v271_v18, %v271_v18 }
  0xcd   :  { %v238_v62 = vpop.f32.mrf.mxu2  ;;  %v276_v2 = vmul.f32 %v889_v61, %v889_v61 }
  0xce   :  { %v239_v63 = vadd.f32 %v238_v62, %v103_v58  ;;  %v243_v0 = vpop.f32.mrf.mxu3 }
  0xcf   :  { %v283_v9 = vadd.f32 %v276_v2, %v275_v1  ;;  %v244_v11 = vadd.f32 %v243_v0, %v113_v7  ;;  %v49_v7 = vld [vmem:[%s957_s3 + $0x28] sm:$0xff] }
  0xd0   :  { %vm254_vm4 = vcmp.gt.f32.partialorder %v239_v63, 0.0  ;;  %v262_v3 = vmul.f32 0.2, %v239_v63 }
  0xd1   :  { %v284_v16 = vadd.f32 %v283_v9, %v277_v8  ;;  %v264_v19 = vmul.f32 0.2, %v244_v11  ;;  %vm256_vm6 = vcmp.gt.f32.partialorder %v244_v11, 0.0  ;;  %v50_v8 = vld [vmem:[%s957_s3 + $0x30] sm:$0xff]  ;;  %v51_v9 = vld [vmem:[%s957_s3 + $0x38] sm:$0xff] }
  0xd2   :  { %v897_v6 = vsel %vm254_vm4, %v239_v63, %v262_v3 }
  0xd3   :  { %v278_v13 = vmul.f32 %v897_v6, %v897_v6  ;;  %v272_v23 = vsel %vm256_vm6, %v244_v11, %v264_v19 }
  0xd4   :  { %v280_v30 = vmul.f32 %v272_v23, %v272_v23 }
  0xd5   :  { %v285_v21 = vadd.f32 %v284_v16, %v278_v13 }
  0xd6   :  { %v246_v14 = vpop.f32.mrf.mxu3 }
  0xd7   :  { %v247_v15 = vadd.f32 %v246_v14, %v118_v12  ;;  %v286_v28 = vadd.f32 %v285_v21, %v279_v22  ;;  %v326_v14 = vpop.permute.xlu2 %325 }
  0xd9   :  { %v265_v20 = vmul.f32 0.2, %v247_v15  ;;  %vm257_vm7 = vcmp.gt.f32.partialorder %v247_v15, 0.0  ;;  %v287_v34 = vadd.f32 %v286_v28, %v280_v30 }
  0xdb   :  { %v273_v24 = vsel %vm257_vm7, %v247_v15, %v265_v20  ;;  %v331_v15 = vpop.permute.xlu0 %330 }
  0xdc   :  { %v281_v31 = vmul.f32 %v273_v24, %v273_v24 }
  0xde   :  { %v248_v27 = vpop.f32.mrf.mxu3  ;;  %v288_v37 = vadd.f32 %v287_v34, %v281_v31 }
  0xdf   :  { %v249_v29 = vadd.f32 %v248_v27, %v123_v26  ;;  %v341_v19 = vpop.permute.xlu2 %340 }
  0xe1   :  { %v266_v32 = vmul.f32 0.2, %v249_v29  ;;  %vm258_vm8 = vcmp.gt.f32.partialorder %v249_v29, 0.0 }
  0xe3   :  { %v274_v35 = vsel %vm258_vm8, %v249_v29, %v266_v32  ;;  %v346_v25 = vpop.permute.xlu0 %345  ;;  %v351_v29 = vpop.permute.xlu1 %350 }
  0xe4   :  { %v282_v36 = vmul.f32 %v274_v35, %v274_v35 }
  0xe6   :  { %v289_v39 = vadd.f32 %v288_v37, %v282_v36 }
  0xe7   :  { %v356_v36 = vpop.permute.xlu2 %355 }
  0xe8   :  { %v290_v40 = vrot.slane %v289_v39, 4 }
  0xea   :  { %v291_v42 = vadd.f32 %v290_v40, %v289_v39 }
  0xec   :  { %v292_v43 = vrot.slane %v291_v42, 2 }
  0xee   :  { %v293_v45 = vadd.f32 %v292_v43, %v291_v42 }
  0xf0   :  { %v294_v46 = vrot.slane %v293_v45, 1 }
  0xf2   :  { %v295_v48 = vadd.f32 %v294_v46, %v293_v45 }
  0xf4   :  { %v303_v49 = vmul.f32 %v903_v47, %v295_v48 }
  0xf6   :  { %v304_v50 = vadd.f32 1e-06, %v303_v49 }
  0xf8   :  { %690 = vrsqrt.f32 %v304_v50  ;;  %vm311_vm11 = vweird.f32 %v304_v50 }
  0xfe   :  { %v691_v51 = vpop.eup %690 }
  0xff   :  { %v306_v52 = vmul.f32 %v691_v51, %v304_v50  ;;  %vm312_vm10 = vweird.f32 %v691_v51 }
 0x100   :  { %vm313_vm12 = vmor %vm311_vm11, %vm312_vm10 }
 0x101   :  { %v307_v53 = vmul.f32 %v691_v51, %v306_v52 }
 0x103   :  { %v308_v54 = vmul.f32 0.5, %v307_v53  ;;  %v361_v53 = vpop.permute.xlu0 %360 }
 0x105   :  { %v309_v55 = vsub.f32 1.5, %v308_v54 }
 0x107   :  { %v310_v56 = vmul.f32 %v691_v51, %v309_v55 }
 0x109   :  { %v314_v57 = vsel %vm313_vm12, %v691_v51, %v310_v56 }
 0x10a   :  { %v322_v58 = vmul.f32 %v314_v57, %v274_v35  ;;  %v321_v60 = vmul.f32 %v314_v57, %v273_v24  ;;  %v320_v62 = vmul.f32 %v314_v57, %v272_v23  ;;  %v319_v63 = vmul.f32 %v314_v57, %v271_v18 }
 0x10b   :  { %v318_v0 = vmul.f32 %v314_v57, %v897_v6  ;;  %v317_v1 = vmul.f32 %v314_v57, %v895_v4  ;;  %v316_v2 = vmul.f32 %v314_v57, %v889_v61  ;;  %v315_v3 = vmul.f32 %v314_v57, %v887_v59  ;;  %v45_v6 = vld [vmem:[%s957_s3 + $0x8] sm:$0xff]  ;;  %v46_v61 = vld [vmem:[%s957_s3 + $0x10] sm:$0xff]  ;;  %v47_v59 = vld [vmem:[%s957_s3 + $0x18] sm:$0xff] }
 0x10c   :  { %396 = vmatpush.msra.mxu1 %v322_v58  ;;  %v48_v4 = vld [vmem:[%s957_s3 + $0x20] sm:$0xff] }
 0x10e   :  { %397 = vmatpush.msra.mxu1 %v321_v60 }
 0x110   :  { %398 = vmatpush.msra.mxu1 %v320_v62 }
 0x112   :  { %399 = vmatpush.msra.mxu1 %v319_v63 }
 0x114   :  { %400 = vmatpush.msra.mxu1 %v318_v0 }
 0x116   :  { %401 = vmatpush.msra.mxu1 %v317_v1 }
 0x118   :  { %402 = vmatpush.msra.mxu1 %v316_v2 }
 0x11a   :  { %403 = vmatpush.msra.mxu1 %v315_v3 }
 0x11b   :  { %645 = vmatmul.msk.f32.vlgmr.msra.gmra.mxu1 %vm363_vm13, %v44_v5 }
 0x123   :  { %646 = vmatmul.msk.f32.gmra.mxu1 %vm363_vm13, %v45_v6 }
 0x12b   :  { %647 = vmatmul.msk.f32.gmra.mxu1 %vm363_vm13, %v46_v61 }
 0x133   :  { %648 = vmatmul.msk.f32.gmra.mxu1 %vm363_vm13, %v47_v59 }
 0x13b   :  { %649 = vmatmul.msk.f32.gmra.mxu1 %vm363_vm13, %v48_v4 }
 0x143   :  { %650 = vmatmul.msk.f32.gmra.mxu1 %vm363_vm13, %v49_v7 }
 0x14b   :  { %651 = vmatmul.msk.f32.gmra.mxu1 %vm363_vm13, %v50_v8 }
 0x153   :  { %652 = vmatmul.msk.f32.gmra.mxu1 %vm363_vm13, %v51_v9 }
 0x198   :  { %v405_v10 = vpop.f32.mrf.mxu1 }
 0x199   :  { %v406_v20 = vadd.f32 %v405_v10, %v326_v14  ;;  %v502_v14 = vpop.permute.xlu2 %501 }
 0x19b   :  { %v437_v26 = vmul.f32 0.2, %v406_v20  ;;  %vm429_vm15 = vcmp.gt.f32.partialorder %v406_v20, 0.0 }
 0x19d   :  { %v445_v33 = vsel %vm429_vm15, %v406_v20, %v437_v26 }
 0x19e   :  { %v453_v42 = vmul.f32 %v445_v33, %v445_v33 }
 0x1a0   :  { %v408_v11 = vpop.f32.mrf.mxu1 }
 0x1a1   :  { %v409_v18 = vadd.f32 %v408_v11, %v331_v15  ;;  %v517_v26 = vpop.permute.xlu2 %516 }
 0x1a3   :  { %v438_v23 = vmul.f32 0.2, %v409_v18  ;;  %vm430_vm14 = vcmp.gt.f32.partialorder %v409_v18, 0.0 }
 0x1a5   :  { %v942_v30 = vsel %vm430_vm14, %v409_v18, %v438_v23  ;;  %v507_v18 = vpop.permute.xlu0 %506 }
 0x1a6   :  { %v454_v37 = vmul.f32 %v942_v30, %v942_v30 }
 0x1a8   :  { %v411_v12 = vpop.f32.mrf.mxu1  ;;  %v461_v46 = vadd.f32 %v454_v37, %v453_v42 }
 0x1a9   :  { %v412_v21 = vadd.f32 %v411_v12, %v336_v17  ;;  %v497_v12 = vpop.permute.xlu1 %496 }
 0x1ab   :  { %v439_v27 = vmul.f32 0.2, %v412_v21  ;;  %vm431_vm0 = vcmp.gt.f32.partialorder %v412_v21, 0.0 }
 0x1ad   :  { %v447_v34 = vsel %vm431_vm0, %v412_v21, %v439_v27 }
 0x1ae   :  { %v455_v43 = vmul.f32 %v447_v34, %v447_v34 }
 0x1b0   :  { %v414_v13 = vpop.f32.mrf.mxu1  ;;  %v462_v50 = vadd.f32 %v461_v46, %v455_v43 }
 0x1b1   :  { %v415_v24 = vadd.f32 %v414_v13, %v341_v19 }
 0x1b3   :  { %v440_v31 = vmul.f32 0.2, %v415_v24  ;;  %vm432_vm1 = vcmp.gt.f32.partialorder %v415_v24, 0.0 }
 0x1b5   :  { %v448_v39 = vsel %vm432_vm1, %v415_v24, %v440_v31 }
 0x1b6   :  { %v456_v48 = vmul.f32 %v448_v39, %v448_v39 }
 0x1b8   :  { %v417_v16 = vpop.f32.mrf.mxu1  ;;  %v463_v54 = vadd.f32 %v462_v50, %v456_v48 }
 0x1b9   :  { %v418_v28 = vadd.f32 %v417_v16, %v346_v25 }
 0x1bb   :  { %v441_v35 = vmul.f32 0.2, %v418_v28  ;;  %vm433_vm2 = vcmp.gt.f32.partialorder %v418_v28, 0.0 }
 0x1bd   :  { %v449_v44 = vsel %vm433_vm2, %v418_v28, %v441_v35 }
 0x1be   :  { %v457_v51 = vmul.f32 %v449_v44, %v449_v44 }
 0x1c0   :  { %v420_v22 = vpop.f32.mrf.mxu1  ;;  %v464_v58 = vadd.f32 %v463_v54, %v457_v51 }
 0x1c1   :  { %v421_v32 = vadd.f32 %v420_v22, %v351_v29 }
 0x1c3   :  { %v442_v40 = vmul.f32 0.2, %v421_v32  ;;  %vm434_vm3 = vcmp.gt.f32.partialorder %v421_v32, 0.0 }
 0x1c5   :  { %v450_v49 = vsel %vm434_vm3, %v421_v32, %v442_v40  ;;  %v522_v40 = vpop.permute.xlu0 %521 }
 0x1c6   :  { %v458_v55 = vmul.f32 %v450_v49, %v450_v49 }
 0x1c8   :  { %v423_v38 = vpop.f32.mrf.mxu1  ;;  %v465_v63 = vadd.f32 %v464_v58, %v458_v55 }
 0x1c9   :  { %v424_v41 = vadd.f32 %v423_v38, %v356_v36 }
 0x1cb   :  { %v443_v45 = vmul.f32 0.2, %v424_v41  ;;  %vm435_vm4 = vcmp.gt.f32.partialorder %v424_v41, 0.0 }
 0x1cd   :  { %v451_v52 = vsel %vm435_vm4, %v424_v41, %v443_v45 }
 0x1ce   :  { %v459_v60 = vmul.f32 %v451_v52, %v451_v52 }
 0x1d0   :  { %v426_v56 = vpop.f32.mrf.mxu1  ;;  %v466_v1 = vadd.f32 %v465_v63, %v459_v60 }
 0x1d1   :  { %v427_v57 = vadd.f32 %v426_v56, %v361_v53 }
 0x1d3   :  { %vm436_vm5 = vcmp.gt.f32.partialorder %v427_v57, 0.0  ;;  %v444_v62 = vmul.f32 0.2, %v427_v57 }
 0x1d5   :  { %v452_v0 = vsel %vm436_vm5, %v427_v57, %v444_v62 }
 0x1d6   :  { %v460_v2 = vmul.f32 %v452_v0, %v452_v0 }
 0x1d8   :  { %v467_v3 = vadd.f32 %v466_v1, %v460_v2 }
 0x1da   :  { %v468_v5 = vrot.slane %v467_v3, 4 }
 0x1dc   :  { %v469_v6 = vadd.f32 %v468_v5, %v467_v3 }
 0x1de   :  { %v470_v61 = vrot.slane %v469_v6, 2 }
 0x1e0   :  { %v471_v59 = vadd.f32 %v470_v61, %v469_v6 }
 0x1e2   :  { %v472_v4 = vrot.slane %v471_v59, 1 }
 0x1e4   :  { %v473_v7 = vadd.f32 %v472_v4, %v471_v59 }
 0x1e6   :  { %v474_v8 = vmul.f32 %v473_v7, %v903_v47  ;;  %v512_v47 = vpop.permute.xlu1 %511 }
 0x1e8   :  { %v475_v9 = vadd.f32 1e-06, %v474_v8 }
 0x1ea   :  { %692 = vrsqrt.f32 %v475_v9  ;;  %vm482_vm7 = vweird.f32 %v475_v9 }
 0x1f0   :  { %v693_v10 = vpop.eup %692 }
 0x1f1   :  { %v477_v11 = vmul.f32 %v693_v10, %v475_v9  ;;  %vm483_vm6 = vweird.f32 %v693_v10 }
 0x1f2   :  { %vm484_vm8 = vmor %vm482_vm7, %vm483_vm6 }
 0x1f3   :  { %v478_v13 = vmul.f32 %v693_v10, %v477_v11 }
 0x1f5   :  { %v479_v15 = vmul.f32 0.5, %v478_v13 }
 0x1f7   :  { %v480_v16 = vsub.f32 1.5, %v479_v15 }
 0x1f9   :  { %v481_v17 = vmul.f32 %v693_v10, %v480_v16 }
 0x1fb   :  { %v485_v19 = vsel %vm484_vm8, %v693_v10, %v481_v17 }
 0x1fc   :  { %v486_v20 = vmul.f32 %v485_v19, %v445_v33  ;;  %v487_v21 = vmul.f32 %v485_v19, %v942_v30  ;;  %v488_v22 = vmul.f32 %v485_v19, %v447_v34  ;;  %v489_v23 = vmul.f32 %v485_v19, %v448_v39  ;;  %v527_v30 = vpop.permute.xlu1 %526  ;;  %v532_v39 = vpop.permute.xlu2 %531 }
 0x1fd   :  { %v490_v27 = vmul.f32 %v485_v19, %v449_v44  ;;  %v491_v31 = vmul.f32 %v485_v19, %v450_v49  ;;  %v492_v36 = vmul.f32 %v485_v19, %v451_v52  ;;  %v493_v41 = vmul.f32 %v485_v19, %v452_v0 }
 0x1fe   :  { %v534_v24 = vmul.f32 %v497_v12, %v486_v20  ;;  %v535_v25 = vmul.f32 %v502_v14, %v487_v21  ;;  %v536_v28 = vmul.f32 %v507_v18, %v488_v22  ;;  %v537_v32 = vmul.f32 %v512_v47, %v489_v23 }
 0x1ff   :  { %v538_v37 = vmul.f32 %v517_v26, %v490_v27  ;;  %v539_v33 = vmul.f32 %v522_v40, %v491_v31  ;;  %v540_v34 = vmul.f32 %v527_v30, %v492_v36  ;;  %v541_v45 = vmul.f32 %v532_v39, %v493_v41 }
 0x200   :  { %v542_v29 = vadd.f32 %v535_v25, %v534_v24  ;;  %v555_v52 = vstv %s960_s6  ;;  %s584_s6 = sshll.u32 %s961_s7, 4  ;;  %s585_s6 = int_to_ptr.hbm [resolvable:$true] %s584_s6 }
 0x202   :  { %v543_v35 = vadd.f32 %v542_v29, %v536_v28 }
 0x204   :  { %v544_v38 = vadd.f32 %v543_v35, %v537_v32 }
 0x206   :  { %v545_v42 = vadd.f32 %v544_v38, %v538_v37 }
 0x208   :  { %v546_v43 = vadd.f32 %v545_v42, %v539_v33 }
 0x20a   :  { %v547_v46 = vadd.f32 %v546_v43, %v540_v34 }
 0x20c   :  { %v548_v48 = vadd.f32 %v547_v46, %v541_v45 }
 0x20e   :  { %v549_v44 = vrot.slane %v548_v48, 4 }
 0x210   :  { %v550_v50 = vadd.f32 %v549_v44, %v548_v48 }
 0x212   :  { %v551_v51 = vrot.slane %v550_v50, 2 }
 0x214   :  { %v552_v49 = vadd.f32 %v551_v51, %v550_v50 }
 0x216   :  { %v553_v53 = vrot.slane %v552_v49, 1 }
 0x218   :  { %v554_v54 = vadd.f32 %v553_v53, %v552_v49 }
 0x21a   :  { %v556_v55 = vadd.f32 %v555_v52, %v554_v54 }
 0x21c   :  { %v653_v56 = vmul.f32 -1.442695, %v556_v55 }
 0x21e   :  { %694 = vpow2.f32 %v653_v56 }
 0x224   :  { %v695_v57 = vpop.eup %694 }
 0x225   :  { %v560_v58 = vadd.f32 1.0, %v695_v57 }
 0x227   :  { %696 = vrcp.f32 %v560_v58  ;;  %v572_v0 = vand.u32 2147483648, %v560_v58  ;;  %v570_v2 = vand.u32 2147483647, %v560_v58  ;;  %vm566_vm10 = vweird.f32 %v560_v58 }
 0x229   :  { %v573_v5 = vor.u32 1.1754944e-38, %v572_v0  ;;  %vm571_vm12 = vcmp.eq.f32.partialorder %v570_v2, 8.507059e+37 }
 0x22d   :  { %v697_v60 = vpop.eup %696 }
 0x22e   :  { %v562_v62 = vmul.f32 %v697_v60, %v560_v58  ;;  %vm567_vm9 = vweird.f32 %v697_v60 }
 0x22f   :  { %vm568_vm11 = vmor %vm566_vm10, %vm567_vm9 }
 0x230   :  { %v563_v63 = vsub.f32 1.0, %v562_v62 }
 0x232   :  { %v564_v1 = vmul.f32 %v697_v60, %v563_v63 }
 0x234   :  { %v565_v3 = vadd.f32 %v697_v60, %v564_v1 }
 0x236   :  { %v569_v6 = vsel %vm568_vm11, %v697_v60, %v565_v3 }
 0x237   :  { %v574_v61 = vsel %vm571_vm12, %v573_v5, %v569_v6 }
 0x238   :  { %576 = vst [vmem:[#allocation3] sm:$0x1] %v574_v61 }
 0x239   :  { %587 = dma.vmem_to_hbm [thread:$0]  %s583_s15, 16, %s585_s6, [#allocation4]  }
 0x23a   :  { %722 = dma.done.wait [#allocation4], 16  }
 0x23b   :  { %723 = vsyncadd [#allocation4], 4294967280 }
 0x23c   :  { %592 = vsyncpa [#allocation4], 1 }

</bundles_post_ra>
